<compile_context>
chip_gen: v7x
topology: tpu7x:2x2x1
jax: 0.10.0
libtpu: 0.0.40
codegen_flags: <defaults>
</compile_context>

<pallas_src>
import functools

import jax
import jax.numpy as jnp
from jax.experimental import pallas as pl
from jax.experimental.pallas import tpu as pltpu


def _fold_lanes(v, width):
    """Tree-sum lane-aligned slices of a (C, T) plane down to (C, width)."""
    t = v.shape[-1]
    parts = [v[:, g * width:(g + 1) * width] for g in range(t // width)]
    while len(parts) > 1:
        nxt = [parts[i] + parts[i + 1] for i in range(0, len(parts) - 1, 2)]
        if len(parts) % 2:
            nxt.append(parts[-1])
        parts = nxt
    return parts[0]


def _dice_stats_kernel(logits_ref, labels_ref, acc_ref, ids_ref, *,
                       max_val, min_val, need_psum, acc_width, tile,
                       n_points, mask_mode, ignore_label):
    """Accumulates narrow lane-wise per-class statistics over N tiles.

    logits_ref: (C, tile) logits block (classes on sublanes, points on lanes).
    labels_ref: (1, tile) int32 labels block.
    acc_ref:    (num_stats, C, acc_width) f32 resident accumulator:
        row 0: sum_n softmax(x)_nc * t_soft_nc   (intersection)
        row 1: sum_n softmax(x)_nc ** 2          (powerize=True union term)
        row 2: sum_n onehot_nc                   (class counts -> tmask, N_valid)
        row 3: sum_n softmax(x)_nc               (powerize=False only)
    ids_ref:    (C, tile) int32 scratch holding the class-id plane (written once).
    """
    j = pl.program_id(0)

    @pl.when(j == 0)
    def _init():
        acc_ref[...] = jnp.zeros_like(acc_ref)
        ids_ref[...] = jax.lax.broadcasted_iota(jnp.int32, ids_ref.shape, 0)

    def accumulate(masked):
        x = logits_ref[...].astype(jnp.float32)          # (C, T)
        lbl = labels_ref[...]                            # (1, T) int32
        class_ids = ids_ref[...]                         # (C, T) int32

        if masked:
            # Positional validity (covers the ragged last block: OOB columns of
            # a partial Pallas block contain unspecified data) + ignore_label.
            col = jax.lax.broadcasted_iota(jnp.int32, lbl.shape, 1) + j * tile
            valid = col < n_points                       # (1, T) bool
            if ignore_label is not None:
                valid = jnp.logical_and(valid, lbl != ignore_label)
            lbl_eff = jnp.where(valid, lbl, jnp.int32(-1))
        else:
            lbl_eff = lbl

        # Numerically stable softmax over the class (sublane) axis.
        m = jnp.max(x, axis=0, keepdims=True)            # (1, T)
        e = jnp.exp(x - m)                               # (C, T)
        s = jnp.sum(e, axis=0, keepdims=True)            # (1, T)
        p = e * pl.reciprocal(s)                         # (C, T)
        if masked:
            # Select (not multiply): NaN-safe against garbage in OOB columns.
            p = jnp.where(valid, p, 0.0)

        hit = class_ids == lbl_eff                       # (C, T) bool
        onehot = hit.astype(jnp.float32)
        t_soft = jnp.where(hit, max_val, min_val)        # (C, T)

        stats = [p * t_soft, p * p, onehot]
        if need_psum:                                    # powerize=False only
            stats.append(p)
        for i, v in enumerate(stats):
            acc_ref[i] += _fold_lanes(v, acc_width)      # narrow RMW per stat

    if mask_mode == "all":
        accumulate(True)
    elif mask_mode == "last":
        last = pl.num_programs(0) - 1

        @pl.when(j != last)
        def _bulk():
            accumulate(False)

        @pl.when(j == last)
        def _tail():
            accumulate(True)
    else:  # "none"
        accumulate(False)


def soft_dice_loss(logits, labels, *, eps=0.05, powerize=True, use_tmask=True,
                   neg_range=False, ignore_label=None, return_class=False,
                   tile_n=8192, acc_width=512, logits_dtype=None):
    """Pallas implementation of SoftDICELoss.forward (is_kitti=False)."""
    n, c = logits.shape
    assert c >= 2
    max_val = 1.0 - eps
    min_val = eps / (c - 1)

    lane = 128
    tile_n = max(lane, (int(tile_n) // lane) * lane)
    tile = max(lane, min(tile_n, pl.cdiv(n, lane) * lane))
    num_tiles = pl.cdiv(n, tile)

    aw = min(max(lane, (int(acc_width) // lane) * lane), tile)
    if tile % aw:
        aw = lane                       # lane always divides tile

    has_partial = (n % tile) != 0
    if ignore_label is not None:
        mask_mode = "all"
    elif has_partial:
        mask_mode = "all" if num_tiles == 1 else "last"
    else:
        mask_mode = "none"

    labels2d = labels.astype(jnp.int32).reshape(1, n)

    # Single wrapper-side layout pass: (N, C) -> (C, N) so points sit on the
    # 128-wide lane axis.  No padding pass; ragged tail masked in-kernel.
    logits_t = jnp.transpose(logits, (1, 0))
    if logits_dtype is not None:
        # Optional HBM-bandwidth saver (e.g. jnp.bfloat16); fuses into the
        # transpose copy.  In-kernel math stays float32.
        logits_t = logits_t.astype(logits_dtype)

    num_stats = 3 if powerize else 4

    kernel = functools.partial(
        _dice_stats_kernel, max_val=max_val, min_val=min_val,
        need_psum=not powerize, acc_width=aw, tile=tile, n_points=n,
        mask_mode=mask_mode,
        ignore_label=None if ignore_label is None else int(ignore_label))

    stats = pl.pallas_call(
        kernel,
        out_shape=jax.ShapeDtypeStruct((num_stats, c, aw), jnp.float32),
        grid_spec=pltpu.PrefetchScalarGridSpec(
            num_scalar_prefetch=0,
            grid=(num_tiles,),
            in_specs=[
                pl.BlockSpec((c, tile), lambda j: (0, j)),
                pl.BlockSpec((1, tile), lambda j: (0, j)),
            ],
            out_specs=pl.BlockSpec((num_stats, c, aw), lambda j: (0, 0, 0)),
            scratch_shapes=[pltpu.VMEM((c, tile), jnp.int32)],
        ),
        compiler_params=pltpu.CompilerParams(
            dimension_semantics=("arbitrary",)),
        # VMEM footprint at tile=8192 is a few MiB, well under the default
        # scoped limit on all generations; raise vmem_limit_bytes if tile_n is
        # pushed towards 32768.
    )(logits_t, labels2d)

    # ---- tiny epilogue: reduce the lane axis, then the C-element math.
    stats = stats.sum(axis=-1)                    # (num_stats, C) f32
    intersection = stats[0]
    sq_sum = stats[1]
    cnt = stats[2]

    # sum_n t_soft_nc reconstructed algebraically; N_valid = sum_c cnt_c.
    n_valid = jnp.sum(cnt)
    tsoft_sum = min_val * n_valid + (max_val - min_val) * cnt

    union_point = sq_sum if powerize else stats[3]
    union = union_point + tsoft_sum + 1e-12

    if use_tmask:
        tmask = (cnt > 0).astype(jnp.float32)
    else:
        tmask = jnp.ones((c,), jnp.float32)

    iou_class = tmask * 2.0 * intersection / union
    iou = jnp.sum(iou_class) / (jnp.sum(tmask) + 1e-12)

    if neg_range:
        dice_loss, dice_class = -iou, -iou_class
    else:
        dice_loss, dice_class = 1.0 - iou, 1.0 - iou_class

    if return_class:
        return dice_loss, dice_class
    return dice_loss


def _reference(logits, labels, eps=0.05, powerize=True, ignore_label=None):
    """Pure-JAX reference of the same forward (for a sanity check)."""
    if ignore_label is not None:
        keep = labels != ignore_label
        logits = logits[keep]
        labels = labels[keep]
    _, c = logits.shape
    max_val = 1.0 - eps
    min_val = eps / (c - 1)
    onehot = jax.nn.one_hot(labels, c, dtype=jnp.float32)
    t_soft = onehot * max_val + (1.0 - onehot) * min_val
    p = jax.nn.softmax(logits.astype(jnp.float32), axis=-1)
    inter = jnp.sum(p * t_soft, axis=0)
    if powerize:
        union = jnp.sum(p * p, axis=0) + jnp.sum(t_soft, axis=0) + 1e-12
    else:
        union = jnp.sum(p, axis=0) + jnp.sum(t_soft, axis=0) + 1e-12
    tmask = (jnp.sum(onehot, axis=0) > 0).astype(jnp.float32)
    iou = jnp.sum(tmask * 2.0 * inter / union) / (jnp.sum(tmask) + 1e-12)
    return 1.0 - iou


if __name__ == "__main__":
    key = jax.random.PRNGKey(0)
    k1, k2, k3, k4 = jax.random.split(key, 4)

    # Small point-cloud-like problem: 256 points, 10 classes.
    N, C = 256, 10
    logits = jax.random.normal(k1, (N, C), dtype=jnp.float32)
    labels = jax.random.randint(k2, (N,), 0, C, dtype=jnp.int32)

    loss = jax.block_until_ready(soft_dice_loss(logits, labels))
    ref = jax.block_until_ready(_reference(logits, labels))
    assert jnp.allclose(loss, ref, rtol=1e-5, atol=1e-5), (loss, ref)

    # Ragged N: exercises the partial last block + in-kernel positional mask.
    N2 = 200
    logits2 = jax.random.normal(k3, (N2, C), dtype=jnp.float32)
    labels2 = jax.random.randint(k4, (N2,), 0, C, dtype=jnp.int32)
    loss2 = jax.block_until_ready(soft_dice_loss(logits2, labels2))
    ref2 = jax.block_until_ready(_reference(logits2, labels2))
    assert jnp.allclose(loss2, ref2, rtol=1e-5, atol=1e-5), (loss2, ref2)

    # powerize=False branch (accumulates sum_n softmax).
    loss3 = jax.block_until_ready(soft_dice_loss(logits, labels, powerize=False))
    ref3 = jax.block_until_ready(_reference(logits, labels, powerize=False))
    assert jnp.allclose(loss3, ref3, rtol=1e-5, atol=1e-5), (loss3, ref3)

    # ignore_label path (handled fully in-kernel, no wrapper label passes).
    labels4 = labels.at[::7].set(255)
    loss4 = jax.block_until_ready(
        soft_dice_loss(logits, labels4, ignore_label=255))
    ref4 = jax.block_until_ready(
        _reference(logits, labels4, ignore_label=255))
    assert jnp.allclose(loss4, ref4, rtol=1e-5, atol=1e-5), (loss4, ref4)

    print("KERNEL_OK")
</pallas_src>

<mosaic_0001>
module attributes {stable_mosaic.version = 11 : i64} {
  func.func @_dice_stats_kernel(%arg0: i32, %arg1: memref<10x256xf32, #tpu.memory_space<vmem>>, %arg2: memref<1x256xi32, #tpu.memory_space<vmem>>, %arg3: memref<3x10x256xf32, #tpu.memory_space<vmem>>, %arg4: memref<10x256xi32, #tpu.memory_space<vmem>>) attributes {dimension_semantics = [#tpu.dimension_semantics<arbitrary>], iteration_bounds = array<i64: 1>, scalar_prefetch = 0 : i64, scratch_operands = 1 : i64, tpu.core_type = #tpu.core_type<tc>, window_params = [{transform_indices = @transform_0, window_bounds = array<i64: 10, 256>}, {transform_indices = @transform_1, window_bounds = array<i64: 1, 256>}, {pipeline_mode = #tpu.pipeline_mode<synchronous>, transform_indices = @transform_2, window_bounds = array<i64: 3, 10, 256>}]} {
    %c0_i32 = arith.constant 0 : i32
    %0 = arith.cmpi eq, %arg0, %c0_i32 : i32
    %1 = arith.extui %0 : i1 to i32
    %c0_i32_0 = arith.constant 0 : i32
    %2 = arith.cmpi ne, %1, %c0_i32_0 : i32
    scf.if %2 {
      %cst_25 = arith.constant 0.000000e+00 : f32
      %43 = vector.broadcast %cst_25 : f32 to vector<3x10x256xf32>
      %c0_26 = arith.constant 0 : index
      %c0_27 = arith.constant 0 : index
      %c0_28 = arith.constant 0 : index
      %44 = vector.load %arg3[%c0_26, %c0_27, %c0_28] : memref<3x10x256xf32, #tpu.memory_space<vmem>>, vector<3x10x256xf32>
      tpu.vector_store %arg3[%c0_26, %c0_27, %c0_28], %43 {strides = array<i32>} : memref<3x10x256xf32, #tpu.memory_space<vmem>>, vector<3x10x256xf32>,
      %45 = tpu.iota {dimensions = array<i32: 0>} : vector<10x256xi32>
      %c0_29 = arith.constant 0 : index
      %c0_30 = arith.constant 0 : index
      %46 = vector.load %arg4[%c0_29, %c0_30] : memref<10x256xi32, #tpu.memory_space<vmem>>, vector<10x256xi32>
      tpu.vector_store %arg4[%c0_29, %c0_30], %45 {strides = array<i32>} : memref<10x256xi32, #tpu.memory_space<vmem>>, vector<10x256xi32>,
    } else {
    }
    %c0 = arith.constant 0 : index
    %c0_1 = arith.constant 0 : index
    %3 = vector.load %arg1[%c0, %c0_1] : memref<10x256xf32, #tpu.memory_space<vmem>>, vector<10x256xf32>
    %c0_2 = arith.constant 0 : index
    %c0_3 = arith.constant 0 : index
    %4 = vector.load %arg2[%c0_2, %c0_3] : memref<1x256xi32, #tpu.memory_space<vmem>>, vector<1x256xi32>
    %c0_4 = arith.constant 0 : index
    %c0_5 = arith.constant 0 : index
    %5 = vector.load %arg4[%c0_4, %c0_5] : memref<10x256xi32, #tpu.memory_space<vmem>>, vector<10x256xi32>
    %cst = arith.constant dense<0xFF800000> : vector<256xf32>
    %6 = vector.multi_reduction <maximumf>, %3, %cst [0] : vector<10x256xf32> to vector<256xf32>
    %7 = vector.shape_cast %6 : vector<256xf32> to vector<1x256xf32>
    %8 = vector.broadcast %7 : vector<1x256xf32> to vector<10x256xf32>
    %9 = arith.subf %3, %8 : vector<10x256xf32>
    %10 = math.exp %9 : vector<10x256xf32>
    %cst_6 = arith.constant dense<0.000000e+00> : vector<256xf32>
    %11 = vector.multi_reduction <add>, %10, %cst_6 [0] : vector<10x256xf32> to vector<256xf32>
    %12 = vector.shape_cast %11 : vector<256xf32> to vector<1x256xf32>
    %13 = tpu.reciprocal %12 : vector<1x256xf32> -> vector<1x256xf32>
    %14 = vector.broadcast %13 : vector<1x256xf32> to vector<10x256xf32>
    %15 = arith.mulf %10, %14 : vector<10x256xf32>
    %16 = vector.broadcast %4 : vector<1x256xi32> to vector<10x256xi32>
    %17 = arith.cmpi eq, %5, %16 : vector<10x256xi32>
    %18 = arith.extui %17 : vector<10x256xi1> to vector<10x256xi32>
    %19 = arith.sitofp %18 : vector<10x256xi32> to vector<10x256xf32>
    %cst_7 = arith.constant 0.949999988 : f32
    %cst_8 = arith.constant 0.00555555569 : f32
    %20 = vector.broadcast %cst_7 : f32 to vector<10x256xf32>
    %21 = vector.broadcast %cst_8 : f32 to vector<10x256xf32>
    %22 = arith.select %17, %20, %21 : vector<10x256xi1>, vector<10x256xf32>
    %23 = arith.mulf %15, %22 : vector<10x256xf32>
    %24 = arith.mulf %15, %15 : vector<10x256xf32>
    %c0_9 = arith.constant 0 : index
    %c0_10 = arith.constant 0 : index
    %c0_11 = arith.constant 0 : index
    %25 = vector.load %arg3[%c0_9, %c0_10, %c0_11] : memref<3x10x256xf32, #tpu.memory_space<vmem>>, vector<1x10x256xf32>
    %26 = vector.shape_cast %25 : vector<1x10x256xf32> to vector<10x256xf32>
    %27 = arith.addf %26, %23 : vector<10x256xf32>
    %c0_12 = arith.constant 0 : index
    %c0_13 = arith.constant 0 : index
    %c0_14 = arith.constant 0 : index
    %28 = vector.load %arg3[%c0_12, %c0_13, %c0_14] : memref<3x10x256xf32, #tpu.memory_space<vmem>>, vector<1x10x256xf32>
    %29 = vector.shape_cast %28 : vector<1x10x256xf32> to vector<10x256xf32>
    %30 = vector.shape_cast %27 : vector<10x256xf32> to vector<1x10x256xf32>
    tpu.vector_store %arg3[%c0_12, %c0_13, %c0_14], %30 {strides = array<i32>} : memref<3x10x256xf32, #tpu.memory_space<vmem>>, vector<1x10x256xf32>,
    %c1 = arith.constant 1 : index
    %c0_15 = arith.constant 0 : index
    %c0_16 = arith.constant 0 : index
    %31 = vector.load %arg3[%c1, %c0_15, %c0_16] : memref<3x10x256xf32, #tpu.memory_space<vmem>>, vector<1x10x256xf32>
    %32 = vector.shape_cast %31 : vector<1x10x256xf32> to vector<10x256xf32>
    %33 = arith.addf %32, %24 : vector<10x256xf32>
    %c1_17 = arith.constant 1 : index
    %c0_18 = arith.constant 0 : index
    %c0_19 = arith.constant 0 : index
    %34 = vector.load %arg3[%c1_17, %c0_18, %c0_19] : memref<3x10x256xf32, #tpu.memory_space<vmem>>, vector<1x10x256xf32>
    %35 = vector.shape_cast %34 : vector<1x10x256xf32> to vector<10x256xf32>
    %36 = vector.shape_cast %33 : vector<10x256xf32> to vector<1x10x256xf32>
    tpu.vector_store %arg3[%c1_17, %c0_18, %c0_19], %36 {strides = array<i32>} : memref<3x10x256xf32, #tpu.memory_space<vmem>>, vector<1x10x256xf32>,
    %c2 = arith.constant 2 : index
    %c0_20 = arith.constant 0 : index
    %c0_21 = arith.constant 0 : index
    %37 = vector.load %arg3[%c2, %c0_20, %c0_21] : memref<3x10x256xf32, #tpu.memory_space<vmem>>, vector<1x10x256xf32>
    %38 = vector.shape_cast %37 : vector<1x10x256xf32> to vector<10x256xf32>
    %39 = arith.addf %38, %19 : vector<10x256xf32>
    %c2_22 = arith.constant 2 : index
    %c0_23 = arith.constant 0 : index
    %c0_24 = arith.constant 0 : index
    %40 = vector.load %arg3[%c2_22, %c0_23, %c0_24] : memref<3x10x256xf32, #tpu.memory_space<vmem>>, vector<1x10x256xf32>
    %41 = vector.shape_cast %40 : vector<1x10x256xf32> to vector<10x256xf32>
    %42 = vector.shape_cast %39 : vector<10x256xf32> to vector<1x10x256xf32>
    tpu.vector_store %arg3[%c2_22, %c0_23, %c0_24], %42 {strides = array<i32>} : memref<3x10x256xf32, #tpu.memory_space<vmem>>, vector<1x10x256xf32>,
    return
  }
  func.func @transform_0(%arg0: i32) -> (i32, i32) {
    %c0_i32 = arith.constant 0 : i32
    %c0_i32_0 = arith.constant 0 : i32
    return %c0_i32, %arg0 : i32, i32
  }
  func.func @transform_1(%arg0: i32) -> (i32, i32) {
    %c0_i32 = arith.constant 0 : i32
    %c0_i32_0 = arith.constant 0 : i32
    return %c0_i32, %arg0 : i32, i32
  }
  func.func @transform_2(%arg0: i32) -> (i32, i32, i32) {
    %c0_i32 = arith.constant 0 : i32
    %c0_i32_0 = arith.constant 0 : i32
    %c0_i32_1 = arith.constant 0 : i32
    %c0_i32_2 = arith.constant 0 : i32
    return %c0_i32, %c0_i32_0, %c0_i32_1 : i32, i32, i32
  }
}

</mosaic_0001>

<bundles_post_ra>
// kernel: tpu_custom_call.1
= control target key start
LH: loop header
LB: loop body
LE: loop exit
PB: predicated region body
PF: predicated region fallthrough
CT: control target
= control target key end

     0   :  { %7 = vsyncpa [#allocation4], 0  ;;  %s244_s9 = smov [#allocation3]   ;;  %s395_s0 = inlined_call_operand.hbm [shape: f32[10,256], index: 0, kind: input, shape index: {}]   ;;  %s396_s1 = inlined_call_operand.vmem [shape: s32[1,256], index: 1, kind: input, shape index: {}]   ;;  %s397_s2 = inlined_call_operand.vmem [shape: f32[3,10,256], index: 2, kind: output, shape index: {}]  }
   0x1   :  { %s13_s10 = sshll.u32 %s244_s9, 4  ;;  %s220_s13 = scalar_lea.hbm %s395_s0, 512  ;;  %s14_s10 = int_to_ptr.vmem [resolvable:$true] %s13_s10 }
   0x2   :  { %p221_p0 = scmp.ne.s32.totalorder %s395_s0, %s220_s13  ;;  %p224_p1 = scmp.lt.u32.totalorder %s220_s13, %s395_s0 }
   0x4   :  { %p226_p2 = pnand %p224_p1, %p221_p0 }
   0x6   :  { %229 = shalt.err (!%p226_p2)
}
   0x7   :  { %s230_s18 = scalar_lea.vmem %s14_s10, 512  ;;  %p235_p4 = scmp.lt.s32.totalorder %s14_s10, %s14_s10 }
   0x8   :  { %p231_p3 = scmp.ne.s32.totalorder %s14_s10, %s230_s18  ;;  %p236_p5 = scmp.lt.s32.totalorder %s230_s18, %s230_s18 }
   0xa   :  { %p237_p6 = por %p236_p5, %p235_p4 }
   0xc   :  { %p238_p7 = pnand %p237_p6, %p231_p3 }
   0xe   :  { %241 = shalt.err (!%p238_p7)
}
   0xf   :  { %s245_s19 = smov 256   ;;  %s246_s20 = smov 16  }
  0x10   :  { %19 = dma.hbm_to_vmem [thread:$0]  %s395_s0, 512, %s14_s10, [#allocation4], %s245_s19, %s245_s19, %s246_s20  }
  0x11   :  { %242 = dma.done.wait [#allocation4], 512  }
  0x12   :  { %243 = vsyncadd [#allocation4], 4294966784  ;;  %v41_v0 = vlaneseq  ;;  %v247_v1 = vmov 0.0   ;;  %vm57_vm0 = vcmask 1041408   ;;  %v52_v6 = vld [vmem:[%s396_s1] sm:$0x3] }
  0x13   :  { %31 = vst [vmem:[%s397_s2 + $0x10] sm:$0x3] %v247_v1  ;;  %32 = vst [vmem:[%s397_s2 + $0x18] sm:$0x3] %v247_v1  ;;  %v48_v7 = vld [vmem:[#allocation3] sm:$0xff]  ;;  %v49_v13 = vld [vmem:[#allocation3 + $0x8] sm:$0xff] }
  0x14   :  { %35 = vst [vmem:[%s397_s2 + $0x30] sm:$0x3] %v247_v1  ;;  %36 = vst [vmem:[%s397_s2 + $0x38] sm:$0x3] %v247_v1  ;;  %v294_v2 = vshrl.u32 %v41_v0, 7 }
  0x15   :  { %39 = vst [vmem:[%s397_s2 + $0x50] sm:$0x3] %v247_v1  ;;  %40 = vst [vmem:[%s397_s2 + $0x58] sm:$0x3] %v247_v1  ;;  %v50_v8 = vld [vmem:[#allocation3 + $0x10] sm:$0x3] }
  0x16   :  { %v43_v3 = vadd.s32 8, %v294_v2  ;;  %v110_v4 = vsub.s32 0, %v294_v2  ;;  %v114_v5 = vsub.s32 1, %v294_v2  ;;  %v58_v11 = vsel %vm57_vm0, %v50_v8, -inf  ;;  %v51_v14 = vld [vmem:[#allocation3 + $0x18] sm:$0x3] }
  0x17   :  { %v59_v12 = vmax.f32 %v48_v7, %v58_v11  ;;  %v66_v15 = vsel %vm57_vm0, %v51_v14, -inf }
  0x18   :  { %46 = vst [vmem:[#allocation2 + $0x10] sm:$0x3] %v43_v3  ;;  %47 = vst [vmem:[#allocation2 + $0x18] sm:$0x3] %v43_v3  ;;  %v302_v9 = vrot.slane %v52_v6, %v110_v4  ;;  %v304_v10 = vrot.slane %v52_v6, %v114_v5  ;;  %v67_v20 = vmax.f32 %v49_v13, %v66_v15  ;;  %v248_v5 = vmov 0.0055555557  }
  0x19   :  { %v60_v18 = vrot.slane %v59_v12, 4 }
  0x1a   :  { %vm116_vm1 = vcmp.eq.s32.totalorder %v294_v2, %v302_v9  ;;  %vm117_vm2 = vcmp.eq.s32.totalorder %v294_v2, %v304_v10  ;;  %v68_v25 = vrot.slane %v67_v20, 4  ;;  %v143_v2 = vld [vmem:[%s397_s2 + $0x18] sm:$0x3] }
  0x1b   :  { %v183_v16 = vsel %vm116_vm1, 1.0, %v247_v1  ;;  %v184_v17 = vsel %vm117_vm2, 1.0, %v247_v1  ;;  %v61_v24 = vmax.f32 %v59_v12, %v60_v18  ;;  %v128_v6 = vsel %vm116_vm1, 0.95, %v248_v5  ;;  %v142_v12 = vld [vmem:[%s397_s2 + $0x10] sm:$0x3] }
  0x1c   :  { %v197_v19 = vld [vmem:[%s397_s2 + $0x50] sm:$0x3]  ;;  %v198_v23 = vld [vmem:[%s397_s2 + $0x58] sm:$0x3]  ;;  %199 = vst [vmem:[%s397_s2 + $0x40] sm:$0xff] %v183_v16  ;;  %200 = vst [vmem:[%s397_s2 + $0x48] sm:$0xff] %v184_v17  ;;  %v69_v31 = vmax.f32 %v67_v20, %v68_v25 }
  0x1d   :  { %v62_v28 = vrot.slane %v61_v24, 2  ;;  %v189_v15 = vld [vmem:[%s397_s2 + $0x30] sm:$0x3] }
  0x1e   :  { %v70_v33 = vrot.slane %v69_v31, 2 }
  0x1f   :  { %v55_v21 = vld [vmem:[#allocation2 + $0x10] sm:$0x3]  ;;  %v321_v22 = vld [vmem:[#allocation2 + $0x18] sm:$0x3]  ;;  %v63_v32 = vmax.f32 %v61_v24, %v62_v28 }
  0x20   :  { %vm118_vm3 = vcmp.eq.s32.totalorder %v55_v21, %v302_v9  ;;  %vm119_vm4 = vcmp.eq.s32.totalorder %v321_v22, %v304_v10  ;;  %v71_v35 = vmax.f32 %v69_v31, %v70_v33  ;;  %v190_v10 = vld [vmem:[%s397_s2 + $0x38] sm:$0x3] }
  0x21   :  { %v185_v26 = vsel %vm118_vm3, 1.0, %v247_v1  ;;  %v186_v27 = vsel %vm119_vm4, 1.0, %v247_v1  ;;  %v64_v34 = vrot.slane %v63_v32, 1 }
  0x22   :  { %v172_v29 = vadd.f32 %v197_v19, %v185_v26  ;;  %v173_v30 = vadd.f32 %v198_v23, %v186_v27  ;;  %v72_v37 = vrot.slane %v71_v35, 1 }
  0x23   :  { %v65_v36 = vmax.f32 %v63_v32, %v64_v34 }
  0x24   :  { %201 = vst [vmem:[%s397_s2 + $0x50] sm:$0x3] %v172_v29  ;;  %202 = vst [vmem:[%s397_s2 + $0x58] sm:$0x3] %v173_v30  ;;  %v73_v40 = vmax.f32 %v71_v35, %v72_v37 }
  0x25   :  { %v74_v38 = vsub.f32 %v48_v7, %v65_v36  ;;  %v76_v39 = vsub.f32 %v50_v8, %v65_v36  ;;  %v130_v7 = vsel %vm118_vm3, 0.95, %v248_v5 }
  0x26   :  { %v75_v43 = vsub.f32 %v49_v13, %v73_v40  ;;  %v77_v44 = vsub.f32 %v51_v14, %v73_v40  ;;  %v129_v13 = vsel %vm117_vm2, 0.95, %v248_v5  ;;  %v131_v14 = vsel %vm119_vm4, 0.95, %v248_v5 }
  0x27   :  { %v78_v41 = vmul.f32 1.442695, %v74_v38  ;;  %v82_v42 = vmul.f32 1.442695, %v76_v39 }
  0x28   :  { %v80_v45 = vmul.f32 1.442695, %v75_v43  ;;  %v84_v46 = vmul.f32 1.442695, %v77_v44 }
  0x29   :  { %208 = vpow2.f32 %v78_v41 }
  0x2a   :  { %210 = vpow2.f32 %v82_v42 }
  0x2b   :  { %212 = vpow2.f32 %v80_v45 }
  0x2c   :  { %214 = vpow2.f32 %v84_v46 }
  0x33   :  { %v209_v47 = vpop.eup %208 }
  0x34   :  { %v211_v48 = vpop.eup %210 }
  0x35   :  { %v86_v49 = vsel %vm57_vm0, %v211_v48, 0.0  ;;  %v213_v50 = vpop.eup %212 }
  0x36   :  { %v87_v51 = vadd.f32 %v209_v47, %v86_v49  ;;  %v215_v52 = vpop.eup %214 }
  0x37   :  { %v94_v54 = vsel %vm57_vm0, %v215_v52, 0.0 }
  0x38   :  { %v88_v53 = vrot.slane %v87_v51, 4  ;;  %v95_v55 = vadd.f32 %v213_v50, %v94_v54 }
  0x3a   :  { %v89_v56 = vadd.f32 %v88_v53, %v87_v51  ;;  %v96_v57 = vrot.slane %v95_v55, 4 }
  0x3c   :  { %v90_v58 = vrot.slane %v89_v56, 2  ;;  %v97_v59 = vadd.f32 %v96_v57, %v95_v55 }
  0x3e   :  { %v91_v60 = vadd.f32 %v90_v58, %v89_v56  ;;  %v98_v61 = vrot.slane %v97_v59, 2 }
  0x40   :  { %v92_v62 = vrot.slane %v91_v60, 1  ;;  %v99_v63 = vadd.f32 %v98_v61, %v97_v59 }
  0x42   :  { %v93_v0 = vadd.f32 %v92_v62, %v91_v60  ;;  %v100_v1 = vrot.slane %v99_v63, 1 }
  0x44   :  { %216 = vrcp.f32 %v93_v0  ;;  %v101_v3 = vadd.f32 %v100_v1, %v99_v63 }
  0x46   :  { %218 = vrcp.f32 %v101_v3 }
  0x4e   :  { %v217_v4 = vpop.eup %216 }
  0x4f   :  { %v104_v8 = vmul.f32 %v217_v4, %v209_v47  ;;  %v106_v11 = vmul.f32 %v217_v4, %v211_v48 }
  0x50   :  { %v219_v9 = vpop.eup %218 }
  0x51   :  { %v132_v16 = vmul.f32 %v128_v6, %v104_v8  ;;  %v134_v17 = vmul.f32 %v130_v7, %v106_v11  ;;  %v136_v18 = vmul.f32 %v104_v8, %v104_v8  ;;  %v138_v19 = vmul.f32 %v106_v11, %v106_v11 }
  0x52   :  { %v105_v20 = vmul.f32 %v219_v9, %v213_v50  ;;  %v107_v21 = vmul.f32 %v219_v9, %v215_v52 }
  0x53   :  { %v146_v23 = vadd.f32 %v142_v12, %v134_v17  ;;  %v159_v24 = vadd.f32 %v189_v15, %v138_v19  ;;  %148 = vst [vmem:[%s397_s2] sm:$0xff] %v132_v16  ;;  %191 = vst [vmem:[%s397_s2 + $0x20] sm:$0xff] %v136_v18 }
  0x54   :  { %v133_v22 = vmul.f32 %v129_v13, %v105_v20  ;;  %v135_v25 = vmul.f32 %v131_v14, %v107_v21  ;;  %v137_v26 = vmul.f32 %v105_v20, %v105_v20  ;;  %v139_v27 = vmul.f32 %v107_v21, %v107_v21 }
  0x55   :  { %150 = vst [vmem:[%s397_s2 + $0x10] sm:$0x3] %v146_v23  ;;  %193 = vst [vmem:[%s397_s2 + $0x30] sm:$0x3] %v159_v24 }
  0x56   :  { %v147_v28 = vadd.f32 %v143_v2, %v135_v25  ;;  %v160_v29 = vadd.f32 %v190_v10, %v139_v27  ;;  %149 = vst [vmem:[%s397_s2 + $0x8] sm:$0xff] %v133_v22  ;;  %192 = vst [vmem:[%s397_s2 + $0x28] sm:$0xff] %v137_v26 }
  0x58   :  { %151 = vst [vmem:[%s397_s2 + $0x18] sm:$0x3] %v147_v28  ;;  %194 = vst [vmem:[%s397_s2 + $0x38] sm:$0x3] %v160_v29 }
  0x59   :  { %182 = vsyncpa [#allocation4], 1 }

</bundles_post_ra>
